<compile_context>
chip_gen: v7x
topology: tpu7x:2x2x1
jax: 0.10.0
libtpu: 0.0.40
codegen_flags: <defaults>
</compile_context>

<pallas_src>
import functools

import jax
import jax.numpy as jnp
from jax.experimental import pallas as pl
from jax.experimental.pallas import tpu as pltpu

EPS = 1e-6

_TARGET_BLOCK_BYTES = 8 * 1024 * 1024          # ~8 MiB per input buffer


def _vmem_limits():
    """Generation-aware (scoped_vmem_limit, working_set_budget) in bytes."""
    try:
        cap = int(pltpu.get_tpu_info().vmem_capacity_bytes)
    except Exception:
        cap = 64 * 1024 * 1024                 # conservative fallback (v7x-sized)
    limit = min((cap * 3) // 4, 96 * 1024 * 1024)   # 128MiB -> 96MiB, 64MiB -> 48MiB
    budget = (limit * 3) // 4                        # headroom for compiler temps
    return limit, budget


def _lane_pack_factor(N, C):
    """k such that (B,N,C)->(B,N//k,k*C) is a free lane-densifying reshape."""
    if C <= 0 or C >= 128 or (128 % C) != 0:
        return 1
    k = 128 // C
    while k > 1 and (N % k) != 0:
        k //= 2
    return max(k, 1)


# ----------------------------------------------------------------------------
# Single-pass path: full (N', C') plane resident, TB instances per grid step.
# ----------------------------------------------------------------------------
def _fused_kernel(x_ref, o_ref, *, n_count, k_groups, c_orig, eps):
    xf = x_ref[...].astype(jnp.float32)                      # (TB, N', C')
    s = jnp.sum(xf, axis=1, keepdims=True)                   # (TB, 1, C')
    # Butterfly all-reduce across the k lane sub-groups (XLU rotations, nearly
    # free) so every lane holds the full per-channel sum -> mu/rstd come out
    # already replicated and no tiling/masking is needed for the normalize.
    shift = c_orig
    while shift < k_groups * c_orig:
        s = s + pltpu.roll(s, shift=shift, axis=2)
        shift *= 2
    mu = s * (1.0 / n_count)
    d = xf - mu                                              # centered (accurate var)
    sq = jnp.sum(d * d, axis=1, keepdims=True)
    shift = c_orig
    while shift < k_groups * c_orig:
        sq = sq + pltpu.roll(sq, shift=shift, axis=2)
        shift *= 2
    denom = float(n_count - 1) if n_count > 1 else float("nan")  # torch var(N=1) -> nan
    rstd = jax.lax.rsqrt(jnp.maximum(sq / denom, 0.0) + eps)
    o_ref[...] = (d * rstd).astype(o_ref.dtype)


def _fused_path(x, *, n_count, k_groups, c_orig, eps, vmem_limit, vmem_budget):
    B, Np, Cp = x.shape
    itemsize = jnp.dtype(x.dtype).itemsize
    per_instance_bytes = Np * Cp * itemsize
    per_instance_work = Np * Cp * (4 * itemsize + 12)        # 2x in + 2x out + f32 temps

    tb = max(1, _TARGET_BLOCK_BYTES // max(per_instance_bytes, 1))
    tb = min(tb, B)
    if B >= 2:
        tb = min(tb, (B + 1) // 2)                           # keep >= 2 grid steps
    while tb > 1 and tb * per_instance_work > vmem_budget:
        tb = max(1, tb // 2)
    # Prefer an even number of grid steps so both v7x TensorCores stay busy.
    if tb > 1 and pl.cdiv(B, tb) % 2 == 1:
        for cand in range(tb, 0, -1):
            if pl.cdiv(B, cand) % 2 == 0:
                tb = cand
                break

    kernel = functools.partial(_fused_kernel, n_count=n_count,
                               k_groups=k_groups, c_orig=c_orig, eps=eps)
    return pl.pallas_call(
        kernel,
        out_shape=jax.ShapeDtypeStruct((B, Np, Cp), x.dtype),
        grid_spec=pltpu.PrefetchScalarGridSpec(
            num_scalar_prefetch=0,
            grid=(pl.cdiv(B, tb),),
            in_specs=[pl.BlockSpec((tb, Np, Cp), lambda b: (b, 0, 0))],
            out_specs=pl.BlockSpec((tb, Np, Cp), lambda b: (b, 0, 0)),
        ),
        compiler_params=pltpu.CompilerParams(
            dimension_semantics=("parallel",),
            vmem_limit_bytes=vmem_limit,
        ),
    )(x)


# ----------------------------------------------------------------------------
# Large-N fallback: two pallas_calls, N' tiled.
#   pass 1: accumulate sum / sumsq over N' tiles -> per-(b, c) mean & rstd
#   pass 2: normalize tile by tile
# ----------------------------------------------------------------------------
def _stats_kernel(x_ref, mean_ref, rstd_ref, sum_sc, sq_sc, *,
                  n_rows, n_count, tn, k_groups, c_orig, eps, mask_last):
    kk = pl.program_id(1)
    last = pl.num_programs(1) - 1

    @pl.when(kk == 0)
    def _():
        sum_sc[...] = jnp.zeros_like(sum_sc)
        sq_sc[...] = jnp.zeros_like(sq_sc)

    xf = x_ref[...].astype(jnp.float32)                      # (1, tn, C')
    if mask_last:
        # Only the trailing partial tile pays the iota/select cost.
        @pl.when(kk != last)
        def _():
            sum_sc[...] += jnp.sum(xf, axis=1, keepdims=True)
            sq_sc[...] += jnp.sum(xf * xf, axis=1, keepdims=True)

        @pl.when(kk == last)
        def _():
            row = kk * tn + jax.lax.broadcasted_iota(jnp.int32, xf.shape, 1)
            xm = jnp.where(row < n_rows, xf, 0.0)
            sum_sc[...] += jnp.sum(xm, axis=1, keepdims=True)
            sq_sc[...] += jnp.sum(xm * xm, axis=1, keepdims=True)
    else:
        sum_sc[...] += jnp.sum(xf, axis=1, keepdims=True)
        sq_sc[...] += jnp.sum(xf * xf, axis=1, keepdims=True)

    @pl.when(kk == last)
    def _():
        s = sum_sc[...]
        sq = sq_sc[...]
        shift = c_orig
        while shift < k_groups * c_orig:
            s = s + pltpu.roll(s, shift=shift, axis=2)
            sq = sq + pltpu.roll(sq, shift=shift, axis=2)
            shift *= 2
        n = float(n_count)
        mu = s * (1.0 / n)
        denom = float(n_count - 1) if n_count > 1 else float("nan")
        var = (sq - n * mu * mu) / denom
        mean_ref[...] = mu
        rstd_ref[...] = jax.lax.rsqrt(jnp.maximum(var, 0.0) + eps)


def _norm_kernel(x_ref, mean_ref, rstd_ref, o_ref):
    xf = x_ref[...].astype(jnp.float32)                      # (1, tn, C')
    o_ref[...] = ((xf - mean_ref[...]) * rstd_ref[...]).astype(o_ref.dtype)


def _round_tn(tn, Np):
    tn = max(1, min(tn, Np))
    if tn == Np or tn % 8 == 0:
        return tn
    tn8 = (tn // 8) * 8                                      # round DOWN, never to Np
    if tn8 >= 8:
        return tn8
    return 8 if Np >= 8 else Np


def _two_pass_path(x, *, n_count, k_groups, c_orig, eps, vmem_limit, vmem_budget,
                   tn=None):
    B, Np, Cp = x.shape
    itemsize = jnp.dtype(x.dtype).itemsize

    if tn is None:
        tn = max(8, (_TARGET_BLOCK_BYTES // max(Cp * itemsize, 1)) // 8 * 8)
        tn = min(tn, Np)
        while tn > 8 and tn * Cp * (4 * itemsize + 12) > vmem_budget:
            tn = max(8, (tn // 2) // 8 * 8)
    tn = _round_tn(tn, Np)
    n_tiles = pl.cdiv(Np, tn)
    mask_last = (Np % tn) != 0

    stats_kernel = functools.partial(
        _stats_kernel, n_rows=Np, n_count=n_count, tn=tn,
        k_groups=k_groups, c_orig=c_orig, eps=eps, mask_last=mask_last)
    mean, rstd = pl.pallas_call(
        stats_kernel,
        out_shape=(jax.ShapeDtypeStruct((B, 1, Cp), jnp.float32),
                   jax.ShapeDtypeStruct((B, 1, Cp), jnp.float32)),
        grid_spec=pltpu.PrefetchScalarGridSpec(
            num_scalar_prefetch=0,
            grid=(B, n_tiles),
            in_specs=[pl.BlockSpec((1, tn, Cp), lambda b, k: (b, k, 0))],
            out_specs=(pl.BlockSpec((1, 1, Cp), lambda b, k: (b, 0, 0)),
                       pl.BlockSpec((1, 1, Cp), lambda b, k: (b, 0, 0))),
            scratch_shapes=[pltpu.VMEM((1, 1, Cp), jnp.float32),
                            pltpu.VMEM((1, 1, Cp), jnp.float32)],
        ),
        compiler_params=pltpu.CompilerParams(
            dimension_semantics=("parallel", "arbitrary"),
            vmem_limit_bytes=vmem_limit,
        ),
    )(x)

    return pl.pallas_call(
        _norm_kernel,
        out_shape=jax.ShapeDtypeStruct((B, Np, Cp), x.dtype),
        grid_spec=pltpu.PrefetchScalarGridSpec(
            num_scalar_prefetch=0,
            grid=(B, n_tiles),
            in_specs=[pl.BlockSpec((1, tn, Cp), lambda b, k: (b, k, 0)),
                      pl.BlockSpec((1, 1, Cp), lambda b, k: (b, 0, 0)),
                      pl.BlockSpec((1, 1, Cp), lambda b, k: (b, 0, 0))],
            out_specs=pl.BlockSpec((1, tn, Cp), lambda b, k: (b, k, 0)),
        ),
        compiler_params=pltpu.CompilerParams(
            dimension_semantics=("parallel", "parallel"),
            vmem_limit_bytes=vmem_limit,
        ),
    )(x, mean, rstd)


# ----------------------------------------------------------------------------
# Public wrapper
# ----------------------------------------------------------------------------
def instancenorm_1d_pallas(x, eps=EPS, *, force_two_pass=False, tn=None):
    """x: (B, N, C) -> (B, N, C), normalized over dim=1 per (batch, channel)."""
    assert x.ndim == 3
    B, N, C = x.shape
    vmem_limit, vmem_budget = _vmem_limits()
    itemsize = jnp.dtype(x.dtype).itemsize

    # Lane-density packing (free, contiguous reshape in HBM); stats are folded
    # back across the k sub-groups in-kernel, so semantics are unchanged.
    k = _lane_pack_factor(N, C)
    xp = x.reshape(B, N // k, k * C) if k > 1 else x
    Np, Cp = N // k, k * C

    fits_single_pass = Np * Cp * (4 * itemsize + 12) <= vmem_budget
    if fits_single_pass and not force_two_pass:
        out = _fused_path(xp, n_count=N, k_groups=k, c_orig=C, eps=eps,
                          vmem_limit=vmem_limit, vmem_budget=vmem_budget)
    else:
        out = _two_pass_path(xp, n_count=N, k_groups=k, c_orig=C, eps=eps,
                             vmem_limit=vmem_limit, vmem_budget=vmem_budget, tn=tn)
    return out.reshape(B, N, C) if k > 1 else out


def instancenorm_1d_ref(x, eps=EPS):
    xf = x.astype(jnp.float32)
    mu = jnp.mean(xf, axis=1, keepdims=True)
    var = jnp.var(xf, axis=1, keepdims=True, ddof=1)
    return ((xf - mu) / jnp.sqrt(var + eps)).astype(x.dtype)


if __name__ == "__main__":
    key = jax.random.PRNGKey(0)
    k1, k2, k3 = jax.random.split(key, 3)

    # Main path: fused single pass, lane-packed (C=32 -> k=4 -> (tb, 4, 128) blocks).
    B, N, C = 4, 16, 32  # num_features = C = 32
    x1 = jax.random.normal(k1, (B, N, C), dtype=jnp.float32)
    out1 = instancenorm_1d_pallas(x1)
    jax.block_until_ready(out1)
    ref1 = instancenorm_1d_ref(x1)
    assert out1.shape == x1.shape and out1.dtype == x1.dtype
    assert jnp.allclose(out1, ref1, atol=1e-4, rtol=1e-4), "fused path mismatch"

    # Large-N fallback path (two-pass, lane-packed, partial trailing N tile).
    x2 = jax.random.normal(k2, (2, 80, 32), dtype=jnp.float32)
    out2 = instancenorm_1d_pallas(x2, force_two_pass=True, tn=8)
    jax.block_until_ready(out2)
    ref2 = instancenorm_1d_ref(x2)
    assert out2.shape == x2.shape and out2.dtype == x2.dtype
    assert jnp.allclose(out2, ref2, atol=1e-4, rtol=1e-4), "two-pass path mismatch"

    # Path where lane packing does not apply (C=48 does not divide 128).
    x3 = jax.random.normal(k3, (2, 16, 48), dtype=jnp.float32)
    out3 = instancenorm_1d_pallas(x3)
    jax.block_until_ready(out3)
    ref3 = instancenorm_1d_ref(x3)
    assert out3.shape == x3.shape and out3.dtype == x3.dtype
    assert jnp.allclose(out3, ref3, atol=1e-4, rtol=1e-4), "unpacked path mismatch"

    print("KERNEL_OK")
</pallas_src>

<mosaic_0001>
module attributes {stable_mosaic.version = 11 : i64} {
  func.func @_fused_kernel(%arg0: i32, %arg1: memref<2x4x128xf32, #tpu.memory_space<vmem>>, %arg2: memref<2x4x128xf32, #tpu.memory_space<vmem>>) attributes {dimension_semantics = [#tpu.dimension_semantics<parallel>], iteration_bounds = array<i64: 2>, scalar_prefetch = 0 : i64, scratch_operands = 0 : i64, tpu.core_type = #tpu.core_type<tc>, window_params = [{transform_indices = @transform_0, window_bounds = array<i64: 2, 4, 128>}, {transform_indices = @transform_1, window_bounds = array<i64: 2, 4, 128>}]} {
    %c0 = arith.constant 0 : index
    %c0_0 = arith.constant 0 : index
    %c0_1 = arith.constant 0 : index
    %0 = vector.load %arg1[%c0, %c0_0, %c0_1] : memref<2x4x128xf32, #tpu.memory_space<vmem>>, vector<2x4x128xf32>
    %cst = arith.constant dense<0.000000e+00> : vector<2x128xf32>
    %1 = vector.multi_reduction <add>, %0, %cst [1] : vector<2x4x128xf32> to vector<2x128xf32>
    %2 = vector.shape_cast %1 : vector<2x128xf32> to vector<2x1x128xf32>
    %c32_i32 = arith.constant 32 : i32
    %3 = tpu.dynamic_rotate %2 by %c32_i32 dim 2 : vector<2x1x128xf32>, i32 -> vector<2x1x128xf32>
    %4 = arith.addf %2, %3 : vector<2x1x128xf32>
    %c64_i32 = arith.constant 64 : i32
    %5 = tpu.dynamic_rotate %4 by %c64_i32 dim 2 : vector<2x1x128xf32>, i32 -> vector<2x1x128xf32>
    %6 = arith.addf %4, %5 : vector<2x1x128xf32>
    %cst_2 = arith.constant 6.250000e-02 : f32
    %7 = vector.broadcast %cst_2 : f32 to vector<2x1x128xf32>
    %8 = arith.mulf %6, %7 : vector<2x1x128xf32>
    %9 = vector.broadcast %8 : vector<2x1x128xf32> to vector<2x4x128xf32>
    %10 = arith.subf %0, %9 : vector<2x4x128xf32>
    %11 = arith.mulf %10, %10 : vector<2x4x128xf32>
    %cst_3 = arith.constant dense<0.000000e+00> : vector<2x128xf32>
    %12 = vector.multi_reduction <add>, %11, %cst_3 [1] : vector<2x4x128xf32> to vector<2x128xf32>
    %13 = vector.shape_cast %12 : vector<2x128xf32> to vector<2x1x128xf32>
    %c32_i32_4 = arith.constant 32 : i32
    %14 = tpu.dynamic_rotate %13 by %c32_i32_4 dim 2 : vector<2x1x128xf32>, i32 -> vector<2x1x128xf32>
    %15 = arith.addf %13, %14 : vector<2x1x128xf32>
    %c64_i32_5 = arith.constant 64 : i32
    %16 = tpu.dynamic_rotate %15 by %c64_i32_5 dim 2 : vector<2x1x128xf32>, i32 -> vector<2x1x128xf32>
    %17 = arith.addf %15, %16 : vector<2x1x128xf32>
    %cst_6 = arith.constant 1.500000e+01 : f32
    %18 = vector.broadcast %cst_6 : f32 to vector<2x1x128xf32>
    %19 = arith.divf %17, %18 : vector<2x1x128xf32>
    %cst_7 = arith.constant 0.000000e+00 : f32
    %20 = vector.broadcast %cst_7 : f32 to vector<2x1x128xf32>
    %21 = arith.maximumf %19, %20 : vector<2x1x128xf32>
    %cst_8 = arith.constant 9.99999997E-7 : f32
    %22 = vector.broadcast %cst_8 : f32 to vector<2x1x128xf32>
    %23 = arith.addf %21, %22 : vector<2x1x128xf32>
    %24 = math.rsqrt %23 : vector<2x1x128xf32>
    %25 = vector.broadcast %24 : vector<2x1x128xf32> to vector<2x4x128xf32>
    %26 = arith.mulf %10, %25 : vector<2x4x128xf32>
    %c0_9 = arith.constant 0 : index
    %c0_10 = arith.constant 0 : index
    %c0_11 = arith.constant 0 : index
    %27 = vector.load %arg2[%c0_9, %c0_10, %c0_11] : memref<2x4x128xf32, #tpu.memory_space<vmem>>, vector<2x4x128xf32>
    tpu.vector_store %arg2[%c0_9, %c0_10, %c0_11], %26 {strides = array<i32>} : memref<2x4x128xf32, #tpu.memory_space<vmem>>, vector<2x4x128xf32>,
    return
  }
  func.func @transform_0(%arg0: i32) -> (i32, i32, i32) {
    %c0_i32 = arith.constant 0 : i32
    %c0_i32_0 = arith.constant 0 : i32
    %c0_i32_1 = arith.constant 0 : i32
    return %arg0, %c0_i32, %c0_i32_0 : i32, i32, i32
  }
  func.func @transform_1(%arg0: i32) -> (i32, i32, i32) {
    %c0_i32 = arith.constant 0 : i32
    %c0_i32_0 = arith.constant 0 : i32
    %c0_i32_1 = arith.constant 0 : i32
    return %arg0, %c0_i32, %c0_i32_0 : i32, i32, i32
  }
}

</mosaic_0001>

<bundles_post_ra>
// kernel: tpu_custom_call.1
= control target key start
LH: loop header
LB: loop body
LE: loop exit
PB: predicated region body
PF: predicated region fallthrough
CT: control target
= control target key end

     0   :  { %6 = vsyncpa [#allocation3], 0  ;;  %s680_s0 = inlined_call_operand.hbm [shape: f32[4,4,128], index: 0, kind: input, shape index: {}]   ;;  %s681_s1 = inlined_call_operand.hbm [shape: f32[4,4,128], index: 1, kind: output, shape index: {}]  }
   0x1   :  { %8 = vsyncpa [#allocation3 + $0x1], 0 }
   0x2   :  { %9 = vsyncpa [#allocation4], 0 }
   0x3   :  { %11 = vsyncpa [#allocation4 + $0x1], 0  ;;  %s500_s6 = smov 0   ;;  %s502_s7 = smov 0  }
   0x4   :  { %s504_s8 = smov 0   ;;  %s506_s9 = smov 0  }
   0x5 LB: > { %s521_s10 = sadd.s32 4294967295, %s481_s9   ;;  %s314_s11 = sadd.s32 4294967294, %s481_s9   ;;  %s481_s9 = sphi %s506_s9, %s694_s9   ;;  %s477_s8 = sphi %s504_s8, %s693_s8   ;;  %s473_s7 = sphi %s502_s7, %s692_s7   ;;  %s469_s6 = sphi %s500_s6, %s691_s6  }
   0x6   : > { %s525_s12 = sadd.s32 1, %s481_s9   ;;  %s24_s13 = sadd.s32 1, %s477_s8 }
   0x7   : > { %s21_s14 = ssub.s32 %s481_s9, %s525_s12  ;;  %p31_p0 = scmp.ne.s32.totalorder %s477_s8, %s473_s7 }
   0x8   : > { %p22_p1 = scmp.eq.s32.totalorder %s21_s14, 0  ;;  %p32_p2 = scmp.eq.s32.totalorder %s481_s9, 0 }
   0x9   : > { %p37_p3 = scmp.ne.s32.totalorder %s473_s7, %s469_s6  ;;  %p38_p4 = scmp.eq.s32.totalorder %s521_s10, 0 }
   0xa   : > { %s537_s15 = scalar_select %p22_p1, %s477_s8, %s24_s13  }
   0xb   : > { %p539_p5 = por %p32_p2, %p31_p0  ;;  %p543_p6 = por %p38_p4, %p37_p3 }
   0xc   : > { %p61_p7 = scmp.eq.s32.totalorder %s521_s10, 1  ;;  %p67_p8 = scmp.eq.s32.totalorder %s314_s11, 1 }
   0xd   : > { %p342_p10 = scmp.lt.s32.totalorder %s481_s9, 2  ;;  %s87_s20 = sand.u32 1, %s477_s8  }
   0xe   : > { %p550_p11 = por %p61_p7, %p31_p0  ;;  %p554_p12 = por %p67_p8, %p37_p3 }
   0xf   : > { %s328_s21 = sshll.u32 %s481_s9, 7  ;;  %s317_s22 = sshll.u32 %s87_s20, 3 }
  0x10   : > { %s685_s18 = scalar_select %p550_p11, 1, 0 }
  0x11   : > { %s686_s19 = scalar_select %p554_p12, 1, 0 }
  0x12   : > { %s563_s25 = scalar_lea.hbm %s680_s0, %s328_s21  ;;  %s91_s26 = scalar_lea.vmem [#allocation2], %s317_s22 }
  0x13   : > { %s98_s27 = sshll.u32 %s91_s26, 4  ;;  %p567_p13 = pnand %p342_p10, %p539_p5  ;;  %s571_s27 = int_to_ptr.vmem [resolvable:$true] %s98_s27 }
  0x14   : > { %s573_s29 = scalar_lea.sflag [#allocation3], %s87_s20  ;;  %s385_s30 = scalar_lea.hbm %s563_s25, 128 }
  0x15   : > { %p386_p0 = scmp.ne.s32.totalorder %s563_s25, %s385_s30  ;;  %p387_p1 = pneg %p567_p13 }
  0x16   : > { %s390_s4 = scalar_lea.hbm %s680_s0, 256  ;;  %p391_p4 = scmp.lt.u32.totalorder %s563_s25, %s680_s0 }
  0x17   : > { %p388_p2 = pnand %p387_p1, %p386_p0  ;;  %p392_p5 = scmp.lt.u32.totalorder %s390_s4, %s385_s30 }
  0x18   : > { %p394_p8 = scmp.lt.u32.totalorder %s385_s30, %s563_s25 }
  0x19   : > { %p389_p3 = pneg %p388_p2  ;;  %p393_p7 = por %p392_p5, %p391_p4 }
  0x1b   : > { %p395_p10 = por %p394_p8, %p393_p7 }
  0x1d   : > { %p396_p9 = pnand %p395_p10, %p389_p3 }
  0x1f   : > { %399 = shalt.err (!%p396_p9)
}
  0x20   : > { %s400_s13 = scalar_lea.vmem %s571_s27, 128  ;;  %s483_s14 = smov [#allocation2]  }
  0x21   : > { %p401_p0 = scmp.ne.s32.totalorder %s571_s27, %s400_s13  ;;  %s405_s16 = sshll.u32 %s483_s14, 4  ;;  %s406_s16 = int_to_ptr.vmem [resolvable:$false] %s405_s16 }
  0x22   : > { %s407_s20 = scalar_lea.vmem %s406_s16, 256  ;;  %p408_p11 = scmp.lt.s32.totalorder %s571_s27, %s406_s16 }
  0x23   : > { %p403_p2 = pnand %p401_p0, %p387_p1  ;;  %p409_p4 = scmp.lt.s32.totalorder %s407_s20, %s400_s13 }
  0x25   : > { %p404_p12 = pneg %p403_p2  ;;  %p410_p5 = por %p409_p4, %p408_p11 }
  0x27   : > { %p411_p7 = pnand %p410_p5, %p404_p12 }
  0x29   : > { %414 = shalt.err (!%p411_p7)
}
  0x2a   : > { %s484_s21 = smov 64   ;;  %s485_s22 = smov 4  }
  0x2b   : > { %337 = dma.hbm_to_vmem [thread:$0]  (!%p567_p13), %s563_s25, 128, %s571_s27, %s573_s29, %s484_s21, %s484_s21, %s485_s22  }
  0x2c   : > { %p320_p9 = scmp.ge.s32.totalorder %s481_s9, 1  ;;  %p106_p1 = scmp.lt.s32.totalorder %s481_s9, 3 }
  0x2e   : > { %p107_p3 = pnand %p320_p9, %p106_p1 }
  0x2f   : > { %s604_s23 = sand.u32 (!%p107_p3), 1, %s473_s7  }
  0x30   : > { %110 = sbr.rel (%p107_p3) target bundleno = 599 (0x257), region = 24  ;;  %s321_s24 = sshll.u32 (!%p107_p3), %s604_s23, 3 }
  0x31   : > { %s113_s26 = scalar_lea.sflag (!%p107_p3), [#allocation3], %s604_s23  ;;  %s116_s30 = scalar_lea.vmem (!%p107_p3), [#allocation2], %s321_s24 }
  0x37   : > { %460 = dma.done.wait (%p543_p6), %s113_s26, 128  }
  0x38   : > { %462 = vsyncadd (%p543_p6), %s113_s26, 4294967168  ;;  %vm139_vm0 = vcmask 1043456   ;;  %v137_v0 = vld [vmem:[%s116_s30] sm:$0xf]  ;;  %v138_v1 = vld [vmem:[%s116_s30 + $0x4] sm:$0xf]  ;;  %v168_v20 = vlaneseq }
  0x39   : > { %v140_v2 = vsel %vm139_vm0, %v137_v0, 0.0  ;;  %v147_v3 = vsel %vm139_vm0, %v138_v1, 0.0  ;;  %s486_s17 = smov 32   ;;  %s487_s25 = smov 64  }
  0x3a   : > { %v141_v4 = vrot.slane %v140_v2, 4  ;;  %v148_v5 = vrot.slane %v147_v3, 4  ;;  %v169_v21 = vshrl.u32 %v168_v20, 7  ;;  %s329_s27 = sshll.u32 %s521_s10, 7  ;;  %s134_s28 = scalar_lea.vmem [#allocation5], %s321_s24 }
  0x3b   : > { %s241_s29 = sshll.u32 %s134_s28, 4  ;;  %s632_s4 = scalar_lea.hbm %s681_s1, %s329_s27  ;;  %s634_s29 = int_to_ptr.vmem [resolvable:$true] %s241_s29 }
  0x3c   : > { %v142_v6 = vadd.f32 %v141_v4, %v140_v2  ;;  %v149_v7 = vadd.f32 %v148_v5, %v147_v3  ;;  %v170_v23 = vsub.s32 0, %v169_v21  ;;  %s228_s5 = scalar_lea.sflag [#allocation4], %s604_s23  ;;  %s415_s10 = scalar_lea.vmem %s634_s29, 128 }
  0x3d   : > { %p416_p6 = scmp.ne.s32.totalorder %s634_s29, %s415_s10  ;;  %p688_p11 = scmp.ne.s32.totalorder %s685_s18, 0 }
  0x3e   : > { %v143_v8 = vrot.slane %v142_v6, 2  ;;  %v150_v9 = vrot.slane %v149_v7, 2  ;;  %s488_s11 = smov [#allocation5]  }
  0x3f   : > { %p417_p12 = pnand %p416_p6, %p688_p11  ;;  %s419_s13 = sshll.u32 %s488_s11, 4  ;;  %s420_s13 = int_to_ptr.vmem [resolvable:$false] %s419_s13 }
  0x40   : > { %v144_v10 = vadd.f32 %v143_v8, %v142_v6  ;;  %v151_v11 = vadd.f32 %v150_v9, %v149_v7  ;;  %s421_s14 = scalar_lea.vmem %s420_s13, 256  ;;  %p422_p8 = scmp.lt.s32.totalorder %s634_s29, %s420_s13 }
  0x41   : > { %p418_p13 = pneg %p417_p12  ;;  %p423_p10 = scmp.lt.s32.totalorder %s421_s14, %s415_s10 }
  0x42   : > { %v145_v12 = vrot.slane %v144_v10, 1  ;;  %v152_v13 = vrot.slane %v151_v11, 1 }
  0x43   : > { %p424_p0 = por %p423_p10, %p422_p8 }
  0x44   : > { %v146_v14 = vadd.f32 %v145_v12, %v144_v10  ;;  %v153_v15 = vadd.f32 %v152_v13, %v151_v11 }
  0x45   : > { %p425_p2 = pnand %p424_p0, %p418_p13 }
  0x46   : > { %154 = vrot.lane.b32.xlu0 %v146_v14, %s486_s17 }
  0x4a   : > { %156 = vrot.lane.b32.xlu0 %v153_v15, %s486_s17 }
  0xb8   : > { %v155_v16 = vpop.permute.xlu0 %154 }
  0xb9   : > { %v158_v17 = vadd.f32 %v155_v16, %v146_v14 }
  0xbb   : > { %160 = vrot.lane.b32.xlu1 %v158_v17, %s487_s25 }
  0xbc   : > { %v157_v18 = vpop.permute.xlu0 %156 }
  0xbd   : > { %v159_v19 = vadd.f32 %v157_v18, %v153_v15 }
  0xbf   : > { %162 = vrot.lane.b32.xlu1 %v159_v19, %s487_s25 }
 0x12d   : > { %v161_v22 = vpop.permute.xlu1 %160 }
 0x12e   : > { %v164_v24 = vadd.f32 %v161_v22, %v158_v17 }
 0x130   : > { %v166_v25 = vmul.f32 0.0625, %v164_v24 }
 0x131   : > { %v163_v26 = vpop.permute.xlu1 %162 }
 0x132   : > { %v171_v27 = vrot.slane %v166_v25, %v170_v23  ;;  %v165_v28 = vadd.f32 %v163_v26, %v159_v19 }
 0x134   : > { %v176_v29 = vsub.f32 %v137_v0, %v171_v27  ;;  %v167_v30 = vmul.f32 0.0625, %v165_v28 }
 0x136   : > { %v178_v31 = vmul.f32 %v176_v29, %v176_v29  ;;  %v175_v32 = vrot.slane %v167_v30, %v170_v23 }
 0x138   : > { %v177_v33 = vsub.f32 %v138_v1, %v175_v32  ;;  %v180_v34 = vsel %vm139_vm0, %v178_v31, 0.0 }
 0x139   : > { %v181_v35 = vrot.slane %v180_v34, 4 }
 0x13a   : > { %v179_v36 = vmul.f32 %v177_v33, %v177_v33 }
 0x13b   : > { %v182_v37 = vadd.f32 %v181_v35, %v180_v34 }
 0x13c   : > { %v187_v38 = vsel %vm139_vm0, %v179_v36, 0.0 }
 0x13d   : > { %v183_v39 = vrot.slane %v182_v37, 2  ;;  %v188_v40 = vrot.slane %v187_v38, 4 }
 0x13f   : > { %v184_v41 = vadd.f32 %v183_v39, %v182_v37  ;;  %v189_v42 = vadd.f32 %v188_v40, %v187_v38 }
 0x141   : > { %v185_v43 = vrot.slane %v184_v41, 1  ;;  %v190_v44 = vrot.slane %v189_v42, 2 }
 0x143   : > { %v186_v45 = vadd.f32 %v185_v43, %v184_v41  ;;  %v191_v46 = vadd.f32 %v190_v44, %v189_v42 }
 0x145   : > { %194 = vrot.lane.b32.xlu0 %v186_v45, %s486_s17  ;;  %v192_v47 = vrot.slane %v191_v46, 1 }
 0x147   : > { %v193_v48 = vadd.f32 %v192_v47, %v191_v46 }
 0x149   : > { %196 = vrot.lane.b32.xlu1 %v193_v48, %s486_s17 }
 0x1b7   : > { %v195_v49 = vpop.permute.xlu0 %194 }
 0x1b8   : > { %v198_v50 = vadd.f32 %v195_v49, %v186_v45 }
 0x1ba   : > { %200 = vrot.lane.b32.xlu0 %v198_v50, %s487_s25 }
 0x1bb   : > { %v197_v51 = vpop.permute.xlu1 %196 }
 0x1bc   : > { %v199_v52 = vadd.f32 %v197_v51, %v193_v48 }
 0x1be   : > { %202 = vrot.lane.b32.xlu1 %v199_v52, %s487_s25 }
 0x22c   : > { %v201_v53 = vpop.permute.xlu0 %200 }
 0x22d   : > { %v204_v54 = vadd.f32 %v201_v53, %v198_v50 }
 0x22f   : > { %v207_v55 = vmul.f32 0.06666667, %v204_v54 }
 0x230   : > { %v203_v56 = vpop.permute.xlu1 %202 }
 0x231   : > { %v209_v57 = vmax.f32 %v207_v55, 0.0  ;;  %v205_v58 = vadd.f32 %v203_v56, %v199_v52 }
 0x233   : > { %v211_v59 = vadd.f32 1e-06, %v209_v57  ;;  %v208_v60 = vmul.f32 0.06666667, %v205_v58 }
 0x235   : > { %381 = vrsqrt.f32 %v211_v59  ;;  %v210_v61 = vmax.f32 %v208_v60, 0.0 }
 0x237   : > { %v212_v62 = vadd.f32 1e-06, %v210_v61 }
 0x239   : > { %383 = vrsqrt.f32 %v212_v62 }
 0x23f   : > { %v382_v63 = vpop.eup %381 }
 0x240   : > { %v218_v0 = vrot.slane %v382_v63, %v170_v23 }
 0x242   : > { %v223_v1 = vmul.f32 %v218_v0, %v176_v29 }
 0x243   : > { %v384_v2 = vpop.eup %383 }
 0x244   : > { %v222_v3 = vrot.slane %v384_v2, %v170_v23  ;;  %225 = vst [vmem:[%s134_s28] sm:$0xf] %v223_v1 }
 0x246   : > { %v224_v4 = vmul.f32 %v222_v3, %v177_v33 }
 0x248   : > { %226 = vst [vmem:[%s134_s28 + $0x4] sm:$0xf] %v224_v4 }
 0x249   : > { %428 = shalt.err (!%p425_p2)
}
 0x24a   : > { %s429_s16 = scalar_lea.hbm %s632_s4, 128  ;;  %s433_s22 = scalar_lea.hbm %s681_s1, 256 }
 0x24b   : > { %p430_p4 = scmp.ne.s32.totalorder %s632_s4, %s429_s16  ;;  %p434_p9 = scmp.lt.u32.totalorder %s632_s4, %s681_s1 }
 0x24c   : > { %p435_p1 = scmp.lt.u32.totalorder %s433_s22, %s429_s16  ;;  %p437_p6 = scmp.lt.u32.totalorder %s429_s16, %s632_s4 }
 0x24d   : > { %p431_p5 = pnand %p430_p4, %p688_p11 }
 0x24e   : > { %p436_p3 = por %p435_p1, %p434_p9 }
 0x24f   : > { %p432_p7 = pneg %p431_p5 }
 0x250   : > { %p438_p12 = por %p437_p6, %p436_p3 }
 0x252   : > { %p439_p13 = pnand %p438_p12, %p432_p7 }
 0x254   : > { %442 = shalt.err (!%p439_p13)
}
 0x255   : > { %s489_s30 = smov 4  }
 0x256   : > { %332 = dma.vmem_to_hbm [thread:$0]  (%p688_p11), %s634_s29, 128, %s632_s4, %s228_s5, %s487_s25, %s487_s25, %s489_s30  }
 0x257 PF: > { %s256_s17 = sand.u32 1, %s469_s6   ;;  %p689_p8 = scmp.ne.s32.totalorder %s686_s19, 0 }
 0x258   : > { %p690_p10 = scmp.ge.s32.totalorder %s481_s9, 2  ;;  %s257_s27 = scalar_lea.sflag [#allocation4], %s256_s17 }
 0x25a   : > { %p339_p0 = pnand %p690_p10, %p689_p8 }
 0x25c   : > { %464 = dma.done.wait (!%p339_p0), %s257_s27, 128  }
 0x25d   : > { %466 = vsyncadd (!%p339_p0), %s257_s27, 4294967168  ;;  %p14_p2 = scmp.ge.s32.totalorder %s525_s12, 4   ;;  %s691_s6 = smov %s473_s7 }
 0x25e   : > { %s692_s7 = smov %s477_s8  ;;  %s693_s8 = smov %s537_s15 }
 0x25f   : > { %s694_s9 = smov %s525_s12  ;;  %16 = sbr.rel (!%p14_p2) target bundleno = 5 (0x5), region = 69 }
 0x266   :  { %262 = vsyncpa [#allocation3], 1 }
 0x267   :  { %264 = vsyncpa [#allocation3 + $0x1], 1 }
 0x268   :  { %265 = vsyncpa [#allocation4], 1 }
 0x269   :  { %267 = vsyncpa [#allocation4 + $0x1], 1 }

</bundles_post_ra>
